<compile_context>
chip_gen: v7x
topology: tpu7x:2x2x1
jax: 0.10.0
libtpu: 0.0.40
codegen_flags: <defaults>
</compile_context>

<pallas_src>
import functools

import jax
import jax.numpy as jnp
from jax.experimental import pallas as pl
from jax.experimental.pallas import tpu as pltpu


def _round_up(n, m):
    return ((n + m - 1) // m) * m


def _gelu(x, approximate):
    if approximate:
        # tanh-approx GELU: transcendental goes to the EUP slot (otherwise idle here),
        # freeing the VALU slot that the exact erf polynomial saturates.
        c = jnp.float32(0.7978845608028654)  # sqrt(2/pi)
        return 0.5 * x * (1.0 + jnp.tanh(c * (x + 0.044715 * x * x * x)))
    # PyTorch F.gelu default = exact erf-based GELU.
    return 0.5 * x * (1.0 + jax.lax.erf(x * jnp.float32(0.7071067811865476)))


def ffn_kernel(x_ref,
               w1_ref, b1_ref,
               w2_ref, b2_ref,
               w3_ref, b3_ref,
               w4t_ref, b4_ref,
               o_ref,
               *, approximate_gelu):
    """One batch tile: 3x (matmul + bias + GELU), BN already folded into weights,
    then the 64->1 output layer as VPU multiply + lane reduction."""

    def mm(a, w_ref):
        # Weights arrive already in their final dtype (bf16 cast hoisted to the wrapper);
        # only the live activation is cast, accumulation stays f32.
        w = w_ref[...]
        return jnp.dot(a.astype(w.dtype), w, preferred_element_type=jnp.float32)

    # dense1 + GELU   (BN1 folded into dense2's weights; dropout = identity at eval)
    h = _gelu(mm(x_ref[...], w1_ref) + b1_ref[...], approximate_gelu)
    # dense2 + GELU   (BN2 folded into dense3's weights)
    h = _gelu(mm(h, w2_ref) + b2_ref[...], approximate_gelu)
    # dense3 + GELU   (BN3 folded into the output layer's weights)
    h = _gelu(mm(h, w3_ref) + b3_ref[...], approximate_gelu)

    # output layer: [TB,64] x [64,1] done on VPU + XLU (lane-axis reduce) instead of a
    # 1-lane-wide MXU matmul.
    o_ref[...] = jnp.sum(h * w4t_ref[...], axis=-1, keepdims=True) + b4_ref[...]


def _choose_tile(b_pad, tile_b):
    """Multiple-of-8 batch tile, capped so the grid has >=2 steps when B allows
    (lets v7x's two TensorCores both get work via the "parallel" grid axis)."""
    tile_b = max(8, _round_up(tile_b, 8))
    half = max(8, _round_up(pl.cdiv(b_pad, 2), 8))
    return min(tile_b, half)


def ffn_forward(x, params, *, tile_b=1024, use_bf16=False, approximate_gelu=False,
                vmem_limit_bytes=None):
    """x: [B, n_features] float32. params: BN-folded weights (see fold_bn_params)."""
    B, F = x.shape
    w1, w2, w3 = params["w1"], params["w2"], params["w3"]
    H1, H2, H3 = w1.shape[1], w2.shape[1], w3.shape[1]

    if use_bf16:
        # Cast once here (not per grid step in the kernel): halves weight DMA/VMEM and
        # the only B-scaling HBM stream (x); matmuls still accumulate in f32.
        w1 = w1.astype(jnp.bfloat16)
        w2 = w2.astype(jnp.bfloat16)
        w3 = w3.astype(jnp.bfloat16)
        x = x.astype(jnp.bfloat16)

    # Pad only to a sublane multiple (no copy at all when B % 8 == 0); the grid uses a
    # ragged last block instead of padding B up to a multiple of TB.
    B_pad = _round_up(B, 8)
    if B_pad != B:
        x = jnp.pad(x, ((0, B_pad - B), (0, 0)))

    TB = _choose_tile(B_pad, tile_b)
    grid = (pl.cdiv(B_pad, TB),)

    const = lambda i: (0, 0)  # weights: one block, resident across all grid steps
    in_specs = [
        pl.BlockSpec((TB, F), lambda i: (i, 0)),      # x tile
        pl.BlockSpec((F, H1), const),                 # w1
        pl.BlockSpec((1, H1), const),                 # b1
        pl.BlockSpec((H1, H2), const),                # w2 (BN1 folded)
        pl.BlockSpec((1, H2), const),                 # b2 (BN1 folded)
        pl.BlockSpec((H2, H3), const),                # w3 (BN2 folded)
        pl.BlockSpec((1, H3), const),                 # b3 (BN2 folded)
        pl.BlockSpec((1, H3), const),                 # w4^T row (BN3 folded)
        pl.BlockSpec((1, 1), const),                  # b4 (BN3 folded)
    ]
    out_specs = pl.BlockSpec((TB, 1), lambda i: (i, 0))

    out = pl.pallas_call(
        functools.partial(ffn_kernel, approximate_gelu=approximate_gelu),
        out_shape=jax.ShapeDtypeStruct((B_pad, 1), jnp.float32),
        grid=grid,
        in_specs=in_specs,
        out_specs=out_specs,
        compiler_params=pltpu.CompilerParams(
            dimension_semantics=("parallel",),
            vmem_limit_bytes=vmem_limit_bytes),  # set explicitly on v5e only if tile_b is pushed very large
    )(x,
      params["w1"] if not use_bf16 else w1, params["b1"],
      params["w2"] if not use_bf16 else w2, params["b2"],
      params["w3"] if not use_bf16 else w3, params["b3"],
      params["w4t"], params["b4"])

    return out[:B]


def init_params(key, n_features, eps=1e-5):
    """Raw (unfolded) parameters: Linear weights [din, dout] (transposed vs PyTorch),
    biases [1, dout], and BatchNorm1d eval-mode scale/shift s_i, t_i."""
    dims = [(n_features, 256), (256, 128), (128, 64), (64, 1)]
    params = {}
    keys = iter(jax.random.split(key, 4 * len(dims) + 16))

    for i, (din, dout) in enumerate(dims):
        bound = 1.0 / jnp.sqrt(jnp.float32(din))
        params[f"w{i + 1}"] = jax.random.uniform(
            next(keys), (din, dout), jnp.float32, -bound, bound)
        params[f"b{i + 1}"] = jax.random.uniform(
            next(keys), (1, dout), jnp.float32, -bound, bound)

    # BatchNorm1d eval: y = gamma*(h - mean)/sqrt(var+eps) + beta  ->  y = h*s + t.
    for i, c in enumerate([256, 128, 64]):
        gamma = 1.0 + 0.1 * jax.random.normal(next(keys), (1, c), jnp.float32)
        beta = 0.1 * jax.random.normal(next(keys), (1, c), jnp.float32)
        rmean = 0.1 * jax.random.normal(next(keys), (1, c), jnp.float32)
        rvar = jnp.abs(1.0 + 0.1 * jax.random.normal(next(keys), (1, c), jnp.float32))
        scale = gamma / jnp.sqrt(rvar + eps)
        shift = beta - rmean * scale
        params[f"s{i + 1}"] = scale
        params[f"t{i + 1}"] = shift
    return params


def fold_bn_params(p):
    """Fold each BN's per-feature scale/shift into the FOLLOWING linear layer.
    (h*s + t) @ W + b == h @ (s.T * W) + (t @ W + b)  -- exact algebra."""
    f = {"w1": p["w1"], "b1": p["b1"]}
    f["w2"] = p["s1"].T * p["w2"]
    f["b2"] = p["b2"] + p["t1"] @ p["w2"]
    f["w3"] = p["s2"].T * p["w3"]
    f["b3"] = p["b3"] + p["t2"] @ p["w3"]
    w4_folded = p["s3"].T * p["w4"]                 # [64, 1]
    f["w4t"] = w4_folded.T                          # [1, 64] row for the VPU/XLU path
    f["b4"] = p["b4"] + p["t3"] @ p["w4"]           # [1, 1]
    return f


def ffn_reference(x, p):
    """Pure-JAX reference with explicit (unfolded) BN, matching the PyTorch module."""
    def gelu(v):
        return 0.5 * v * (1.0 + jax.lax.erf(v / jnp.sqrt(2.0)))
    h = gelu(x @ p["w1"] + p["b1"]) * p["s1"] + p["t1"]
    h = gelu(h @ p["w2"] + p["b2"]) * p["s2"] + p["t2"]
    h = gelu(h @ p["w3"] + p["b3"]) * p["s3"] + p["t3"]
    return h @ p["w4"] + p["b4"]


if __name__ == "__main__":
    key = jax.random.PRNGKey(0)
    k_x, k_p, k_x2 = jax.random.split(key, 3)

    batch, n_features = 8, 32
    x = jax.random.normal(k_x, (batch, n_features), jnp.float32)
    raw = init_params(k_p, n_features)
    folded = fold_bn_params(raw)

    # Small batch, f32 matmuls, exact erf GELU: exact vs reference.
    out = jax.block_until_ready(ffn_forward(x, folded))
    ref = ffn_reference(x, raw)
    assert out.shape == (batch, 1), out.shape
    assert jnp.allclose(out, ref, atol=1e-4, rtol=1e-4), "mismatch vs reference (small)"

    # Non-multiple-of-8 / non-multiple-of-tile batch: exercises the pad-to-8 path,
    # multi-step "parallel" grid, and the ragged last block.
    big_b = 1003
    x2 = jax.random.normal(k_x2, (big_b, n_features), jnp.float32)
    out2 = jax.block_until_ready(ffn_forward(x2, folded, tile_b=256))
    ref2 = ffn_reference(x2, raw)
    assert out2.shape == (big_b, 1), out2.shape
    assert jnp.allclose(out2, ref2, atol=1e-4, rtol=1e-4), "mismatch vs reference (tiled)"

    # bf16 weights + bf16 x (cast hoisted to the wrapper), f32 accumulation.
    out3 = jax.block_until_ready(ffn_forward(x2, folded, tile_b=256, use_bf16=True))
    assert jnp.allclose(out3, ref2, atol=5e-2, rtol=5e-2), "mismatch vs reference (bf16)"

    # tanh-approximate GELU (EUP path): small, bounded deviation from exact erf.
    out4 = jax.block_until_ready(ffn_forward(x2, folded, approximate_gelu=True))
    assert jnp.allclose(out4, ref2, atol=2e-2, rtol=2e-2), "mismatch vs reference (tanh gelu)"

    print("KERNEL_OK")
</pallas_src>

<mosaic_0001>
module attributes {stable_mosaic.version = 11 : i64} {
  func.func @ffn_kernel(%arg0: i32, %arg1: memref<8x32xf32, #tpu.memory_space<vmem>>, %arg2: memref<32x256xf32, #tpu.memory_space<vmem>>, %arg3: memref<1x256xf32, #tpu.memory_space<vmem>>, %arg4: memref<256x128xf32, #tpu.memory_space<vmem>>, %arg5: memref<1x128xf32, #tpu.memory_space<vmem>>, %arg6: memref<128x64xf32, #tpu.memory_space<vmem>>, %arg7: memref<1x64xf32, #tpu.memory_space<vmem>>, %arg8: memref<1x64xf32, #tpu.memory_space<vmem>>, %arg9: memref<1x1xf32, #tpu.memory_space<vmem>>, %arg10: memref<8x1xf32, #tpu.memory_space<vmem>>) attributes {dimension_semantics = [#tpu.dimension_semantics<parallel>], iteration_bounds = array<i64: 1>, scalar_prefetch = 0 : i64, scratch_operands = 0 : i64, tpu.core_type = #tpu.core_type<tc>, window_params = [{transform_indices = @transform_0, window_bounds = array<i64: 8, 32>}, {pipeline_mode = #tpu.pipeline_mode<synchronous>, transform_indices = @transform_1, window_bounds = array<i64: 32, 256>}, {pipeline_mode = #tpu.pipeline_mode<synchronous>, transform_indices = @transform_2, window_bounds = array<i64: 1, 256>}, {pipeline_mode = #tpu.pipeline_mode<synchronous>, transform_indices = @transform_3, window_bounds = array<i64: 256, 128>}, {pipeline_mode = #tpu.pipeline_mode<synchronous>, transform_indices = @transform_4, window_bounds = array<i64: 1, 128>}, {pipeline_mode = #tpu.pipeline_mode<synchronous>, transform_indices = @transform_5, window_bounds = array<i64: 128, 64>}, {pipeline_mode = #tpu.pipeline_mode<synchronous>, transform_indices = @transform_6, window_bounds = array<i64: 1, 64>}, {pipeline_mode = #tpu.pipeline_mode<synchronous>, transform_indices = @transform_7, window_bounds = array<i64: 1, 64>}, {pipeline_mode = #tpu.pipeline_mode<synchronous>, transform_indices = @transform_8, window_bounds = array<i64: 1, 1>}, {transform_indices = @transform_9, window_bounds = array<i64: 8, 1>}]} {
    %c0 = arith.constant 0 : index
    %c0_0 = arith.constant 0 : index
    %0 = vector.load %arg1[%c0, %c0_0] : memref<8x32xf32, #tpu.memory_space<vmem>>, vector<8x32xf32>
    %c0_1 = arith.constant 0 : index
    %c0_2 = arith.constant 0 : index
    %1 = vector.load %arg2[%c0_1, %c0_2] : memref<32x256xf32, #tpu.memory_space<vmem>>, vector<32x256xf32>
    %cst = arith.constant dense<0.000000e+00> : vector<8x256xf32>
    %2 = tpu.matmul %0, %1, %cst {dimension_numbers = #tpu.dot_dimension_numbers<[1], [0], [0], [1], [0, 0, 1, 1], [], []>} : vector<8x32xf32>, vector<32x256xf32>, vector<8x256xf32> -> vector<8x256xf32>
    %c0_3 = arith.constant 0 : index
    %c0_4 = arith.constant 0 : index
    %3 = vector.load %arg3[%c0_3, %c0_4] : memref<1x256xf32, #tpu.memory_space<vmem>>, vector<1x256xf32>
    %4 = vector.broadcast %3 : vector<1x256xf32> to vector<8x256xf32>
    %5 = arith.addf %2, %4 : vector<8x256xf32>
    %cst_5 = arith.constant 5.000000e-01 : f32
    %6 = vector.broadcast %cst_5 : f32 to vector<8x256xf32>
    %7 = arith.mulf %6, %5 : vector<8x256xf32>
    %cst_6 = arith.constant 0.707106769 : f32
    %8 = vector.broadcast %cst_6 : f32 to vector<8x256xf32>
    %9 = arith.mulf %5, %8 : vector<8x256xf32>
    %10 = math.erf %9 : vector<8x256xf32>
    %cst_7 = arith.constant 1.000000e+00 : f32
    %11 = vector.broadcast %cst_7 : f32 to vector<8x256xf32>
    %12 = arith.addf %11, %10 : vector<8x256xf32>
    %13 = arith.mulf %7, %12 : vector<8x256xf32>
    %c0_8 = arith.constant 0 : index
    %c0_9 = arith.constant 0 : index
    %14 = vector.load %arg4[%c0_8, %c0_9] : memref<256x128xf32, #tpu.memory_space<vmem>>, vector<256x128xf32>
    %cst_10 = arith.constant dense<0.000000e+00> : vector<8x128xf32>
    %15 = tpu.matmul %13, %14, %cst_10 {dimension_numbers = #tpu.dot_dimension_numbers<[1], [0], [0], [1], [0, 0, 1, 1], [], []>} : vector<8x256xf32>, vector<256x128xf32>, vector<8x128xf32> -> vector<8x128xf32>
    %c0_11 = arith.constant 0 : index
    %c0_12 = arith.constant 0 : index
    %16 = vector.load %arg5[%c0_11, %c0_12] : memref<1x128xf32, #tpu.memory_space<vmem>>, vector<1x128xf32>
    %17 = vector.broadcast %16 : vector<1x128xf32> to vector<8x128xf32>
    %18 = arith.addf %15, %17 : vector<8x128xf32>
    %cst_13 = arith.constant 5.000000e-01 : f32
    %19 = vector.broadcast %cst_13 : f32 to vector<8x128xf32>
    %20 = arith.mulf %19, %18 : vector<8x128xf32>
    %cst_14 = arith.constant 0.707106769 : f32
    %21 = vector.broadcast %cst_14 : f32 to vector<8x128xf32>
    %22 = arith.mulf %18, %21 : vector<8x128xf32>
    %23 = math.erf %22 : vector<8x128xf32>
    %cst_15 = arith.constant 1.000000e+00 : f32
    %24 = vector.broadcast %cst_15 : f32 to vector<8x128xf32>
    %25 = arith.addf %24, %23 : vector<8x128xf32>
    %26 = arith.mulf %20, %25 : vector<8x128xf32>
    %c0_16 = arith.constant 0 : index
    %c0_17 = arith.constant 0 : index
    %27 = vector.load %arg6[%c0_16, %c0_17] : memref<128x64xf32, #tpu.memory_space<vmem>>, vector<128x64xf32>
    %cst_18 = arith.constant dense<0.000000e+00> : vector<8x64xf32>
    %28 = tpu.matmul %26, %27, %cst_18 {dimension_numbers = #tpu.dot_dimension_numbers<[1], [0], [0], [1], [0, 0, 1, 1], [], []>} : vector<8x128xf32>, vector<128x64xf32>, vector<8x64xf32> -> vector<8x64xf32>
    %c0_19 = arith.constant 0 : index
    %c0_20 = arith.constant 0 : index
    %29 = vector.load %arg7[%c0_19, %c0_20] : memref<1x64xf32, #tpu.memory_space<vmem>>, vector<1x64xf32>
    %30 = vector.broadcast %29 : vector<1x64xf32> to vector<8x64xf32>
    %31 = arith.addf %28, %30 : vector<8x64xf32>
    %cst_21 = arith.constant 5.000000e-01 : f32
    %32 = vector.broadcast %cst_21 : f32 to vector<8x64xf32>
    %33 = arith.mulf %32, %31 : vector<8x64xf32>
    %cst_22 = arith.constant 0.707106769 : f32
    %34 = vector.broadcast %cst_22 : f32 to vector<8x64xf32>
    %35 = arith.mulf %31, %34 : vector<8x64xf32>
    %36 = math.erf %35 : vector<8x64xf32>
    %cst_23 = arith.constant 1.000000e+00 : f32
    %37 = vector.broadcast %cst_23 : f32 to vector<8x64xf32>
    %38 = arith.addf %37, %36 : vector<8x64xf32>
    %39 = arith.mulf %33, %38 : vector<8x64xf32>
    %c0_24 = arith.constant 0 : index
    %c0_25 = arith.constant 0 : index
    %40 = vector.load %arg8[%c0_24, %c0_25] : memref<1x64xf32, #tpu.memory_space<vmem>>, vector<1x64xf32>
    %41 = vector.broadcast %40 : vector<1x64xf32> to vector<8x64xf32>
    %42 = arith.mulf %39, %41 : vector<8x64xf32>
    %cst_26 = arith.constant dense<0.000000e+00> : vector<8xf32>
    %43 = vector.multi_reduction <add>, %42, %cst_26 [1] : vector<8x64xf32> to vector<8xf32>
    %44 = vector.shape_cast %43 : vector<8xf32> to vector<8x1xf32>
    %c0_27 = arith.constant 0 : index
    %c0_28 = arith.constant 0 : index
    %45 = vector.load %arg9[%c0_27, %c0_28] : memref<1x1xf32, #tpu.memory_space<vmem>>, vector<1x1xf32>
    %46 = vector.broadcast %45 : vector<1x1xf32> to vector<8x1xf32>
    %47 = arith.addf %44, %46 : vector<8x1xf32>
    %c0_29 = arith.constant 0 : index
    %c0_30 = arith.constant 0 : index
    %48 = vector.load %arg10[%c0_29, %c0_30] : memref<8x1xf32, #tpu.memory_space<vmem>>, vector<8x1xf32>
    tpu.vector_store %arg10[%c0_29, %c0_30], %47 {strides = array<i32>} : memref<8x1xf32, #tpu.memory_space<vmem>>, vector<8x1xf32>,
    return
  }
  func.func @transform_0(%arg0: i32) -> (i32, i32) {
    %c0_i32 = arith.constant 0 : i32
    %c0_i32_0 = arith.constant 0 : i32
    return %arg0, %c0_i32 : i32, i32
  }
  func.func @transform_1(%arg0: i32) -> (i32, i32) {
    %c0_i32 = arith.constant 0 : i32
    %c0_i32_0 = arith.constant 0 : i32
    %c0_i32_1 = arith.constant 0 : i32
    return %c0_i32, %c0_i32_0 : i32, i32
  }
  func.func @transform_2(%arg0: i32) -> (i32, i32) {
    %c0_i32 = arith.constant 0 : i32
    %c0_i32_0 = arith.constant 0 : i32
    %c0_i32_1 = arith.constant 0 : i32
    return %c0_i32, %c0_i32_0 : i32, i32
  }
  func.func @transform_3(%arg0: i32) -> (i32, i32) {
    %c0_i32 = arith.constant 0 : i32
    %c0_i32_0 = arith.constant 0 : i32
    %c0_i32_1 = arith.constant 0 : i32
    return %c0_i32, %c0_i32_0 : i32, i32
  }
  func.func @transform_4(%arg0: i32) -> (i32, i32) {
    %c0_i32 = arith.constant 0 : i32
    %c0_i32_0 = arith.constant 0 : i32
    %c0_i32_1 = arith.constant 0 : i32
    return %c0_i32, %c0_i32_0 : i32, i32
  }
  func.func @transform_5(%arg0: i32) -> (i32, i32) {
    %c0_i32 = arith.constant 0 : i32
    %c0_i32_0 = arith.constant 0 : i32
    %c0_i32_1 = arith.constant 0 : i32
    return %c0_i32, %c0_i32_0 : i32, i32
  }
  func.func @transform_6(%arg0: i32) -> (i32, i32) {
    %c0_i32 = arith.constant 0 : i32
    %c0_i32_0 = arith.constant 0 : i32
    %c0_i32_1 = arith.constant 0 : i32
    return %c0_i32, %c0_i32_0 : i32, i32
  }
  func.func @transform_7(%arg0: i32) -> (i32, i32) {
    %c0_i32 = arith.constant 0 : i32
    %c0_i32_0 = arith.constant 0 : i32
    %c0_i32_1 = arith.constant 0 : i32
    return %c0_i32, %c0_i32_0 : i32, i32
  }
  func.func @transform_8(%arg0: i32) -> (i32, i32) {
    %c0_i32 = arith.constant 0 : i32
    %c0_i32_0 = arith.constant 0 : i32
    %c0_i32_1 = arith.constant 0 : i32
    return %c0_i32, %c0_i32_0 : i32, i32
  }
  func.func @transform_9(%arg0: i32) -> (i32, i32) {
    %c0_i32 = arith.constant 0 : i32
    %c0_i32_0 = arith.constant 0 : i32
    return %arg0, %c0_i32 : i32, i32
  }
}

</mosaic_0001>

<bundles_post_ra>
// kernel: tpu_custom_call.1
= control target key start
LH: loop header
LB: loop body
LE: loop exit
PB: predicated region body
PF: predicated region fallthrough
CT: control target
= control target key end

     0   :  { %s750_s0 = inlined_call_operand.vmem [shape: f32[8,32], index: 0, kind: input, shape index: {}]   ;;  %s751_s1 = inlined_call_operand.vmem [shape: f32[32,256], index: 1, kind: input, shape index: {}]   ;;  %s752_s2 = inlined_call_operand.vmem [shape: f32[1,256], index: 2, kind: input, shape index: {}]   ;;  %s753_s3 = inlined_call_operand.hbm [shape: f32[256,128], index: 3, kind: input, shape index: {}]   ;;  %s754_s4 = inlined_call_operand.vmem [shape: f32[1,128], index: 4, kind: input, shape index: {}]   ;;  %s755_s5 = inlined_call_operand.vmem [shape: f32[128,64], index: 5, kind: input, shape index: {}]   ;;  %s756_s6 = inlined_call_operand.vmem [shape: f32[1,64], index: 6, kind: input, shape index: {}]   ;;  %s757_s7 = inlined_call_operand.vmem [shape: f32[1,64], index: 7, kind: input, shape index: {}]   ;;  %s758_s8 = inlined_call_operand.<no memory space> [shape: f32[1,1], index: 8, kind: input, shape index: {}]   ;;  %s759_s9 = inlined_call_operand.vmem [shape: f32[8,1], index: 9, kind: output, shape index: {}]  }
   0x1   :  { %v14_v0 = vstv %s758_s8 }
   0x2   :  { %15 = vst [vmem:[#allocation2] sm:$0x1] %v14_v0 }
   0x3   :  { %16 = vsyncpa [#allocation4], 0  ;;  %s587_s11 = smov [#allocation3]   ;;  %s563_s15 = scalar_lea.hbm %s753_s3, 4096 }
   0x4   :  { %s28_s12 = sshll.u32 %s587_s11, 4  ;;  %p564_p0 = scmp.ne.s32.totalorder %s753_s3, %s563_s15  ;;  %s29_s12 = int_to_ptr.vmem [resolvable:$true] %s28_s12 }
   0x5   :  { %p567_p1 = scmp.lt.u32.totalorder %s563_s15, %s753_s3 }
   0x7   :  { %p569_p2 = pnand %p567_p1, %p564_p0 }
   0x9   :  { %572 = shalt.err (!%p569_p2)
}
   0xa   :  { %s573_s8 = scalar_lea.vmem %s29_s12, 4096  ;;  %p578_p4 = scmp.lt.s32.totalorder %s29_s12, %s29_s12 }
   0xb   :  { %p574_p3 = scmp.ne.s32.totalorder %s29_s12, %s573_s8  ;;  %p579_p5 = scmp.lt.s32.totalorder %s573_s8, %s573_s8 }
   0xd   :  { %p580_p6 = por %p579_p5, %p578_p4 }
   0xf   :  { %p581_p7 = pnand %p580_p6, %p574_p3 }
  0x11   :  { %584 = shalt.err (!%p581_p7)
}
  0x12   :  { %s588_s20 = smov 128   ;;  %s589_s21 = smov 8  }
  0x13   :  { %34 = dma.hbm_to_vmem [thread:$0]  %s753_s3, 4096, %s29_s12, [#allocation4], %s588_s20, %s588_s20, %s589_s21  }
  0x14   :  { %585 = dma.done.wait [#allocation4], 4096  }
  0x15   :  { %586 = vsyncadd [#allocation4], 4294963200  ;;  %v590_v1 = vmov 0.0   ;;  %v50_v2 = vld [vmem:[%s751_s1 + $0x8] sm:$0xff]  ;;  %v52_v3 = vld [vmem:[%s751_s1 + $0x18] sm:$0xff]  ;;  %vm69_vm0 = vcmask 261120  }
  0x16   :  { %137 = vmatprep.mubr.f32.mxu0 %v590_v1  ;;  %v49_v4 = vld [vmem:[%s751_s1] sm:$0xff]  ;;  %v485_v5 = vpack.c.bf16 %v52_v3, %v50_v2  ;;  %v51_v6 = vld [vmem:[%s751_s1 + $0x10] sm:$0xff]  ;;  %v54_v7 = vld [vmem:[%s751_s1 + $0x28] sm:$0xff]  ;;  %v591_v3 = vmov 0.0|0.0   ;;  %vm592_vm1 = vmmov 0   ;;  %vm374_vm2 = vcmask 523264  }
  0x17   :  { %v56_v8 = vld [vmem:[%s751_s1 + $0x38] sm:$0xff]  ;;  %v487_v9 = vpack.c.bf16 %v51_v6, %v49_v4  ;;  %v53_v11 = vld [vmem:[%s751_s1 + $0x20] sm:$0xff]  ;;  %v55_v12 = vld [vmem:[%s751_s1 + $0x30] sm:$0xff]  ;;  %vm386_vm3 = vcmask 7168  }
  0x18   :  { %v489_v10 = vpack.c.bf16 %v56_v8, %v54_v7  ;;  %486 = vmatprep.subr.bf16.mxu0 %v485_v5  ;;  %v170_v13 = vld [vmem:[#allocation3 + $0x80] sm:$0xff]  ;;  %v171_v14 = vld [vmem:[#allocation3 + $0x88] sm:$0xff]  ;;  %v491_v16 = vpack.c.bf16 %v55_v12, %v53_v11  ;;  %v172_v19 = vld [vmem:[#allocation3 + $0x90] sm:$0xff]  ;;  %v59_v7 = vlaneseq }
  0x19   :  { %v154_v15 = vld [vmem:[#allocation3] sm:$0xff]  ;;  %488 = vmatpush1.bf16.msra.mxu0 %v487_v9  ;;  %v493_v17 = vpack.c.bf16 %v171_v14, %v170_v13  ;;  %v155_v18 = vld [vmem:[#allocation3 + $0x8] sm:$0xff]  ;;  %v173_v20 = vld [vmem:[#allocation3 + $0x98] sm:$0xff] }
  0x1a   :  { %490 = vmatprep.subr.bf16.mxu0 %v489_v10  ;;  %v495_v21 = vpack.c.bf16 %v155_v18, %v154_v15  ;;  %v497_v22 = vpack.c.bf16 %v173_v20, %v172_v19  ;;  %v156_v23 = vld [vmem:[#allocation3 + $0x10] sm:$0xff]  ;;  %v157_v24 = vld [vmem:[#allocation3 + $0x18] sm:$0xff]  ;;  %v174_v25 = vld [vmem:[#allocation3 + $0xa0] sm:$0xff]  ;;  %v60_v8 = vshrl.u32 %v59_v7, 7 }
  0x1b   :  { %494 = vmatprep.subr.bf16.mxu1 %v493_v17  ;;  %v175_v26 = vld [vmem:[#allocation3 + $0xa8] sm:$0xff]  ;;  %v499_v27 = vpack.c.bf16 %v157_v24, %v156_v23  ;;  %v48_v28 = vld [vmem:[%s750_s0] sm:$0xff]  ;;  %v176_v33 = vld [vmem:[#allocation3 + $0xb0] sm:$0xff] }
  0x1c   :  { %496 = vmatpush3.bf16.msra.mxu1 %v495_v21  ;;  %v501_v29 = vpack.c.bf16 %v175_v26, %v174_v25  ;;  %v158_v30 = vld [vmem:[#allocation3 + $0x20] sm:$0xff]  ;;  %v159_v31 = vld [vmem:[#allocation3 + $0x28] sm:$0xff]  ;;  %v177_v34 = vld [vmem:[#allocation3 + $0xb8] sm:$0xff]  ;;  %v61_v9 = vsub.s32 0, %v60_v8  ;;  %v65_v11 = vsub.s32 1, %v60_v8 }
  0x1d   :  { %492 = vmatpush1.bf16.msra.mxu0 %v491_v16  ;;  %498 = vmatprep.subr.bf16.mxu1 %v497_v22  ;;  %v503_v32 = vpack.c.bf16 %v159_v31, %v158_v30  ;;  %v505_v35 = vpack.c.bf16 %v177_v34, %v176_v33  ;;  %v160_v36 = vld [vmem:[#allocation3 + $0x30] sm:$0xff]  ;;  %v161_v37 = vld [vmem:[#allocation3 + $0x38] sm:$0xff]  ;;  %v178_v39 = vld [vmem:[#allocation3 + $0xc0] sm:$0xff] }
  0x1e   :  { %v507_v38 = vpack.c.bf16 %v161_v37, %v160_v36  ;;  %v179_v40 = vld [vmem:[#allocation3 + $0xc8] sm:$0xff]  ;;  %v162_v42 = vld [vmem:[#allocation3 + $0x40] sm:$0xff]  ;;  %v180_v45 = vld [vmem:[#allocation3 + $0xd0] sm:$0xff]  ;;  %525 = vmatprep.subr.bf16.mxu0 %v591_v3 }
  0x1f   :  { %v509_v41 = vpack.c.bf16 %v179_v40, %v178_v39  ;;  %v163_v43 = vld [vmem:[#allocation3 + $0x48] sm:$0xff]  ;;  %v181_v46 = vld [vmem:[#allocation3 + $0xd8] sm:$0xff]  ;;  %v164_v48 = vld [vmem:[#allocation3 + $0x50] sm:$0xff] }
  0x20   :  { %393 = vmatmul.mubr.msk.f32.vlgmr.msra.gmra.mrb[0].mxu0 %vm69_vm0, %v48_v28  ;;  %500 = vmatpush3.bf16.msra.mxu1 %v499_v27  ;;  %v511_v44 = vpack.c.bf16 %v163_v43, %v162_v42  ;;  %v513_v47 = vpack.c.bf16 %v181_v46, %v180_v45  ;;  %v165_v49 = vld [vmem:[#allocation3 + $0x58] sm:$0xff]  ;;  %v182_v51 = vld [vmem:[#allocation3 + $0xe0] sm:$0xff]  ;;  %v183_v52 = vld [vmem:[#allocation3 + $0xe8] sm:$0xff] }
  0x21   :  { %502 = vmatprep.subr.bf16.mxu1 %v501_v29  ;;  %v515_v50 = vpack.c.bf16 %v165_v49, %v164_v48  ;;  %v517_v53 = vpack.c.bf16 %v183_v52, %v182_v51  ;;  %v166_v54 = vld [vmem:[#allocation3 + $0x60] sm:$0xff]  ;;  %v167_v55 = vld [vmem:[#allocation3 + $0x68] sm:$0xff]  ;;  %v184_v57 = vld [vmem:[#allocation3 + $0xf0] sm:$0xff]  ;;  %482 = vmatprep.mubr.msk.f32.mxu0 %vm592_vm1, %v590_v1 }
  0x22   :  { %v519_v56 = vpack.c.bf16 %v167_v55, %v166_v54  ;;  %v185_v58 = vld [vmem:[#allocation3 + $0xf8] sm:$0xff]  ;;  %v168_v60 = vld [vmem:[#allocation3 + $0x70] sm:$0xff]  ;;  %v269_v0 = vld [vmem:[%s755_s5 + $0x8] sm:$0xff] }
  0x23   :  { %v521_v59 = vpack.c.bf16 %v185_v58, %v184_v57  ;;  %v169_v61 = vld [vmem:[#allocation3 + $0x78] sm:$0xff]  ;;  %v270_v2 = vld [vmem:[%s755_s5 + $0x10] sm:$0xff]  ;;  %v273_v29 = vld [vmem:[%s755_s5 + $0x28] sm:$0xff] }
  0x24   :  { %504 = vmatpush3.bf16.msra.mxu1 %v503_v32  ;;  %v523_v62 = vpack.c.bf16 %v169_v61, %v168_v60  ;;  %v268_v63 = vld [vmem:[%s755_s5] sm:$0xff]  ;;  %v271_v5 = vld [vmem:[%s755_s5 + $0x18] sm:$0xff]  ;;  %v274_v31 = vld [vmem:[%s755_s5 + $0x30] sm:$0xff] }
  0x25   :  { %506 = vmatprep.subr.bf16.mxu1 %v505_v35  ;;  %v526_v4 = vpack.c.bf16 %v269_v0, %v268_v63  ;;  %v529_v6 = vpack.c.bf16 %v271_v5, %v270_v2  ;;  %v57_v10 = vld [vmem:[%s752_s2] sm:$0x3]  ;;  %v275_v32 = vld [vmem:[%s755_s5 + $0x38] sm:$0xff]  ;;  %v277_v35 = vld [vmem:[%s755_s5 + $0x48] sm:$0xff] }
  0x26   :  { %v62_v12 = vrot.slane %v57_v10, %v61_v9  ;;  %v66_v13 = vrot.slane %v57_v10, %v65_v11  ;;  %v272_v28 = vld [vmem:[%s755_s5 + $0x20] sm:$0xff]  ;;  %v535_v33 = vpack.c.bf16 %v275_v32, %v274_v31  ;;  %v278_v37 = vld [vmem:[%s755_s5 + $0x50] sm:$0xff] }
  0x27   :  { %527 = vmatpush3.bf16.msra.mxu0 %v526_v4  ;;  %v532_v30 = vpack.c.bf16 %v273_v29, %v272_v28  ;;  %v276_v34 = vld [vmem:[%s755_s5 + $0x40] sm:$0xff]  ;;  %v282_v43 = vld [vmem:[%s755_s5 + $0x70] sm:$0xff] }
  0x28   :  { %508 = vmatpush3.bf16.msra.mxu1 %v507_v38  ;;  %528 = vmatprep.subr.bf16.mxu0 %v591_v3  ;;  %v538_v36 = vpack.c.bf16 %v277_v35, %v276_v34  ;;  %v279_v38 = vld [vmem:[%s755_s5 + $0x58] sm:$0xff]  ;;  %v280_v40 = vld [vmem:[%s755_s5 + $0x60] sm:$0xff] }
  0x29   :  { %510 = vmatprep.subr.bf16.mxu1 %v509_v41  ;;  %v541_v39 = vpack.c.bf16 %v279_v38, %v278_v37  ;;  %v281_v41 = vld [vmem:[%s755_s5 + $0x68] sm:$0xff]  ;;  %v396_v63 = vld [vmem:[%s757_s7] ss:$0 sm:$0xff] }
  0x2a   :  { %v544_v42 = vpack.c.bf16 %v281_v41, %v280_v40  ;;  %v397_v4 = vld [vmem:[#allocation2] ss:$0 sm:$0xff] }
  0x2b   :  { %530 = vmatpush3.bf16.msra.mxu0 %v529_v6 }
  0x2c   :  { %512 = vmatpush3.bf16.msra.mxu1 %v511_v44  ;;  %531 = vmatprep.subr.bf16.mxu0 %v591_v3  ;;  %v283_v44 = vld [vmem:[%s755_s5 + $0x78] sm:$0xff] }
  0x2d   :  { %514 = vmatprep.subr.bf16.mxu1 %v513_v47  ;;  %v547_v45 = vpack.c.bf16 %v283_v44, %v282_v43  ;;  %v394_v47 = vld [vmem:[%s754_s4] ss:$0 sm:$0xff] }
  0x2f   :  { %533 = vmatpush3.bf16.msra.mxu0 %v532_v30 }
  0x30   :  { %516 = vmatpush3.bf16.msra.mxu1 %v515_v50  ;;  %534 = vmatprep.subr.bf16.mxu0 %v591_v3 }
  0x31   :  { %518 = vmatprep.subr.bf16.mxu1 %v517_v53 }
  0x33   :  { %536 = vmatpush3.bf16.msra.mxu0 %v535_v33 }
  0x34   :  { %520 = vmatpush3.bf16.msra.mxu1 %v519_v56  ;;  %537 = vmatprep.subr.bf16.mxu0 %v591_v3  ;;  %v395_v56 = vld [vmem:[%s756_s6] ss:$0 sm:$0xff] }
  0x35   :  { %522 = vmatprep.subr.bf16.mxu1 %v521_v59 }
  0x37   :  { %539 = vmatpush3.bf16.msra.mxu0 %v538_v36 }
  0x38   :  { %524 = vmatpush3.bf16.msra.mxu1 %v523_v62  ;;  %540 = vmatprep.subr.bf16.mxu0 %v591_v3 }
  0x3b   :  { %542 = vmatpush3.bf16.msra.mxu0 %v541_v39 }
  0x3c   :  { %543 = vmatprep.subr.bf16.mxu0 %v591_v3 }
  0x3f   :  { %545 = vmatpush3.bf16.msra.mxu0 %v544_v42 }
  0x40   :  { %546 = vmatprep.subr.bf16.mxu0 %v591_v3 }
  0x43   :  { %548 = vmatpush3.bf16.msra.mxu0 %v547_v45 }
  0xf3   :  { %v139_v14 = vpop.f32.mrb[0].mxu0 }
  0xf4   :  { %v140_v15 = vadd.f32 %v139_v14, %v62_v12  ;;  %v141_v16 = vpop.f32.mrb[1].mxu0 }
  0xf5   :  { %v142_v17 = vadd.f32 %v141_v16, %v66_v13 }
  0xf6   :  { %v146_v18 = vmul.f32 0.70710677, %v140_v15  ;;  %v144_v25 = vmul.f32 0.5, %v140_v15 }
  0xf7   :  { %v147_v19 = vmul.f32 0.70710677, %v142_v17  ;;  %v145_v23 = vmul.f32 0.5, %v142_v17 }
  0xf8   :  { %555 = verf.f32 %v146_v18 }
  0xf9   :  { %557 = verf.f32 %v147_v19 }
 0x102   :  { %v556_v20 = vpop.eup %555 }
 0x103   :  { %v558_v21 = vpop.eup %557  ;;  %v150_v22 = vadd.f32 1.0, %v556_v20 }
 0x104   :  { %v151_v24 = vadd.f32 1.0, %v558_v21 }
 0x105   :  { %v152_v27 = vmul.f32 %v150_v22, %v144_v25 }
 0x106   :  { %v153_v26 = vmul.f32 %v151_v24, %v145_v23 }
 0x108   :  { %257 = vmatprep.mubr.f32.mxu1 %v153_v26 }
 0x109   :  { %258 = vmatmul.mubr.f32.vlgmr.msra.gmra.mrb[0].mxu1 %v152_v27 }
 0x1dc   :  { %v430_v46 = vpop.f32.mrb[0].mxu1 }
 0x1dd   :  { %v431_v48 = vpop.f32.mrb[1].mxu1 }
 0x1de   :  { %v432_v49 = vadd.f32 %v431_v48, %v430_v46 }
 0x1e0   :  { %v260_v50 = vadd.f32 %v432_v49, %v394_v47 }
 0x1e2   :  { %v264_v51 = vmul.f32 0.70710677, %v260_v50  ;;  %v263_v53 = vmul.f32 0.5, %v260_v50 }
 0x1e4   :  { %559 = verf.f32 %v264_v51 }
 0x1ee   :  { %v560_v52 = vpop.eup %559 }
 0x1ef   :  { %v266_v54 = vadd.f32 1.0, %v560_v52 }
 0x1f1   :  { %v267_v55 = vmul.f32 %v266_v54, %v263_v53 }
 0x1f3   :  { %483 = vmatmul.mubr.f32.vlgmr.msra.gmra.mrb[2].mxu0 %v267_v55 }
 0x2c6   :  { %v357_v1 = vpop.f32.mrb[2].mxu0 }
 0x2c7   :  { %v358_v57 = vadd.f32 %v395_v56, %v357_v1  ;;  %v484_v58 = vpop.f32.mrb[3].mxu0 }
 0x2c9   :  { %v362_v59 = vmul.f32 0.70710677, %v358_v57  ;;  %v361_v61 = vmul.f32 0.5, %v358_v57 }
 0x2cb   :  { %561 = verf.f32 %v362_v59 }
 0x2d5   :  { %v562_v60 = vpop.eup %561 }
 0x2d6   :  { %v364_v62 = vadd.f32 1.0, %v562_v60 }
 0x2d8   :  { %v365_v0 = vmul.f32 %v364_v62, %v361_v61 }
 0x2da   :  { %v373_v2 = vmul.f32 %v396_v63, %v365_v0 }
 0x2dc   :  { %v375_v3 = vsel %vm374_vm2, %v373_v2, 0.0 }
 0x2dd   :  { %376 = vadd.xlane.f32.xlu0 %v375_v3 }
 0x36a   :  { %v377_v5 = vpop.xlane.xlu0 %376 }
 0x36b   :  { %v385_v6 = vadd.f32 %v397_v4, %v377_v5 }
 0x36d   :  { %387 = vst.msk [vmem:[%s759_s9] sm:$0xff] %vm386_vm3, %v385_v6 }
 0x36e   :  { %392 = vsyncpa [#allocation4], 1 }

</bundles_post_ra>
